<compile_context>
chip_gen: v7x
topology: tpu7x:2x2x1
jax: 0.10.0
libtpu: 0.0.40
codegen_flags: <defaults>
</compile_context>

<pallas_src>
import functools

import jax
import jax.numpy as jnp
from jax.experimental import pallas as pl
from jax.experimental.pallas import tpu as pltpu

BN_EPS = 1e-5
LANE = 128
SUBLANE_BF16 = 16
MAX_TILE_H = 512


def _round_up(n, m):
    return ((n + m - 1) // m) * m


def _padded_hidden(h_dim):
    """Hidden dim padded so it divides evenly into H tiles."""
    h_p = _round_up(h_dim, LANE)
    if h_p <= MAX_TILE_H:
        return h_p
    return _round_up(h_dim, MAX_TILE_H)


def _projection_head_kernel(x_ref, w1_ref, bn1_ref, w2_ref, bn2_ref,
                            o_ref, acc_ref, *, b_real):
    """One H-tile of the fused fc1 -> bn1 -> relu -> fc2 (+ bn2 on last step).

    x_ref  : [B_p, Din_p]   bf16  (resident across the grid)
    w1_ref : [Din_p, tH]    bf16  (streamed column tile)
    bn1_ref: [2, tH]        f32   rows = gamma1, beta1 (tile, pad=0)
    w2_ref : [tH, Dout_p]   bf16  (streamed row tile)
    bn2_ref: [2, Dout_p]    f32   rows = gamma2, beta2 (resident, pad=0)
    o_ref  : [B_p, Dout_p]  f32   (written on last step only)
    acc_ref: [B_p, Dout_p]  f32   fc2 accumulator scratch
    """
    k = pl.program_id(0)
    inv_b = jnp.float32(1.0 / b_real)
    b_pad = x_ref.shape[0]

    # ---- fc1 tile: bf16 x bf16 -> f32 accumulate on the MXU ----
    h = jnp.dot(x_ref[...], w1_ref[...], preferred_element_type=jnp.float32)

    # ---- bn1: training-mode batch stats (biased), single data pass ----
    # Zero-padded batch rows contribute 0 to both sums; divide by the real B.
    mean1 = jnp.sum(h, axis=0, keepdims=True) * inv_b
    msq1 = jnp.sum(h * h, axis=0, keepdims=True) * inv_b
    var1 = jnp.maximum(msq1 - mean1 * mean1, 0.0)          # clamp: no NaN in rsqrt
    scale1 = bn1_ref[0:1, :] * jax.lax.rsqrt(var1 + BN_EPS)
    shift1 = bn1_ref[1:2, :] - mean1 * scale1
    h = jnp.maximum(h * scale1 + shift1, 0.0)               # BN affine as one FMA + relu

    # Padded rows would otherwise pick up `shift1`; zero them so they neither
    # contribute to the fc2 accumulator nor to the BN2 statistics.
    if b_pad != b_real:
        row_ids = jax.lax.broadcasted_iota(jnp.int32, (b_pad, 1), 0)
        h = jnp.where(row_ids < b_real, h, 0.0)

    # ---- fc2 partial product, accumulated across H tiles ----
    @pl.when(k == 0)
    def _():
        acc_ref[...] = jnp.zeros_like(acc_ref)

    acc_ref[...] += jnp.dot(h.astype(jnp.bfloat16), w2_ref[...],
                            preferred_element_type=jnp.float32)

    # ---- bn2 + lane-dense store on the last H tile ----
    @pl.when(k == pl.num_programs(0) - 1)
    def _():
        z = acc_ref[...]
        mean2 = jnp.sum(z, axis=0, keepdims=True) * inv_b
        msq2 = jnp.sum(z * z, axis=0, keepdims=True) * inv_b
        var2 = jnp.maximum(msq2 - mean2 * mean2, 0.0)
        scale2 = bn2_ref[0:1, :] * jax.lax.rsqrt(var2 + BN_EPS)
        shift2 = bn2_ref[1:2, :] - mean2 * scale2
        o_ref[...] = (z * scale2 + shift2).astype(o_ref.dtype)


def prepare_projection_params(w1, gamma1, beta1, w2, gamma2, beta2):
    """One-time parameter packing (run at init / after each weight update).

    w1: [Din, H] (= fc1.weight.T), w2: [H, Dout] (= fc2.weight.T).
    Returns lane-padded bf16 weights and packed f32 BN slabs.
    """
    d_in, h_dim = w1.shape
    d_out = w2.shape[1]

    din_p = _round_up(d_in, LANE)
    h_p = _padded_hidden(h_dim)
    dout_p = _round_up(d_out, LANE)

    w1p = jnp.zeros((din_p, h_p), jnp.bfloat16).at[:d_in, :h_dim].set(
        jnp.asarray(w1, jnp.float32).astype(jnp.bfloat16))
    w2p = jnp.zeros((h_p, dout_p), jnp.bfloat16).at[:h_dim, :d_out].set(
        jnp.asarray(w2, jnp.float32).astype(jnp.bfloat16))

    # Padded gamma lanes stay 0 so padded feature columns come out exactly 0.
    bn1 = jnp.zeros((2, h_p), jnp.float32)
    bn1 = bn1.at[0, :h_dim].set(jnp.asarray(gamma1, jnp.float32).reshape(-1))
    bn1 = bn1.at[1, :h_dim].set(jnp.asarray(beta1, jnp.float32).reshape(-1))
    bn2 = jnp.zeros((2, dout_p), jnp.float32)
    bn2 = bn2.at[0, :d_out].set(jnp.asarray(gamma2, jnp.float32).reshape(-1))
    bn2 = bn2.at[1, :d_out].set(jnp.asarray(beta2, jnp.float32).reshape(-1))

    return w1p, bn1, w2p, bn2


@functools.partial(jax.jit, static_argnames=("d_out",))
def projection_head_forward(x, w1p, bn1, w2p, bn2, *, d_out):
    """x: [B, Din] float.  Params from prepare_projection_params.  -> [B, d_out] f32."""
    b_real, d_in = x.shape
    din_p, h_p = w1p.shape
    dout_p = w2p.shape[1]
    b_p = _round_up(b_real, SUBLANE_BF16)

    tile_h = h_p if h_p <= MAX_TILE_H else MAX_TILE_H
    num_h_tiles = h_p // tile_h

    # Per-step input prep: only x is padded / cast (weights are prepacked).
    xp = jnp.zeros((b_p, din_p), jnp.bfloat16).at[:b_real, :d_in].set(
        x.astype(jnp.bfloat16))

    # VMEM working-set estimate: resident x/bn2/acc/out + double-buffered tiles.
    vmem_bytes = (
        b_p * din_p * 2                       # x (resident, bf16)
        + 2 * (din_p * tile_h * 2)            # w1 column tile, double-buffered
        + 2 * (tile_h * dout_p * 2)           # w2 row tile, double-buffered
        + 2 * (2 * tile_h * 4)                # bn1 tile, double-buffered
        + 2 * dout_p * 4                      # bn2 (resident)
        + b_p * dout_p * 4                    # fc2 accumulator scratch
        + 2 * b_p * dout_p * 4                # output block
        + 2 * b_p * tile_h * 4                # h tile intermediates (f32 + bf16 copy)
    )
    vmem_limit = min(max(int(1.5 * vmem_bytes), 32 << 20), 64 << 20)

    grid_spec = pltpu.PrefetchScalarGridSpec(
        num_scalar_prefetch=0,
        grid=(num_h_tiles,),
        in_specs=[
            pl.BlockSpec((b_p, din_p), lambda k: (0, 0)),      # x: resident
            pl.BlockSpec((din_p, tile_h), lambda k: (0, k)),   # w1 column tile
            pl.BlockSpec((2, tile_h), lambda k: (0, k)),       # gamma1/beta1 tile
            pl.BlockSpec((tile_h, dout_p), lambda k: (k, 0)),  # w2 row tile
            pl.BlockSpec((2, dout_p), lambda k: (0, 0)),       # gamma2/beta2: resident
        ],
        out_specs=pl.BlockSpec((b_p, dout_p), lambda k: (0, 0)),
        scratch_shapes=[pltpu.VMEM((b_p, dout_p), jnp.float32)],
    )

    out_padded = pl.pallas_call(
        functools.partial(_projection_head_kernel, b_real=b_real),
        out_shape=jax.ShapeDtypeStruct((b_p, dout_p), jnp.float32),
        grid_spec=grid_spec,
        compiler_params=pltpu.CompilerParams(
            dimension_semantics=("arbitrary",),
            vmem_limit_bytes=vmem_limit),
    )(xp, w1p, bn1, w2p, bn2)

    return out_padded[:b_real, :d_out]


if __name__ == "__main__":
    # Small config consistent with the module:
    #   n_classes_encoder=32, projection_hidden_dim=64, projection_output_dim=32
    B, D_IN, D_HID, D_OUT = 8, 32, 64, 32

    key = jax.random.PRNGKey(0)
    k_x, k_w1, k_w2 = jax.random.split(key, 3)

    x = jax.random.normal(k_x, (B, D_IN), dtype=jnp.float32)

    # nn.init.normal_(weight, std=0.01); PyTorch Linear weight is [out, in],
    # stored here transposed [in, out] so the kernel computes x @ W directly.
    w1 = 0.01 * jax.random.normal(k_w1, (D_IN, D_HID), dtype=jnp.float32)
    w2 = 0.01 * jax.random.normal(k_w2, (D_HID, D_OUT), dtype=jnp.float32)

    # BatchNorm1d affine at init: gamma=1, beta=0.
    gamma1 = jnp.ones((D_HID,), jnp.float32)
    beta1 = jnp.zeros((D_HID,), jnp.float32)
    gamma2 = jnp.ones((D_OUT,), jnp.float32)
    beta2 = jnp.zeros((D_OUT,), jnp.float32)

    # One-time parameter packing (hoisted out of the per-step forward).
    w1p, bn1, w2p, bn2 = prepare_projection_params(
        w1, gamma1, beta1, w2, gamma2, beta2)

    out = jax.block_until_ready(
        projection_head_forward(x, w1p, bn1, w2p, bn2, d_out=D_OUT))

    # Pure-JAX reference with matched precision (bf16 MXU operands, f32 BN math).
    def _bn(v, g, b):
        m = v.mean(axis=0)
        var = jnp.maximum((v * v).mean(axis=0) - m * m, 0.0)
        s = g * jax.lax.rsqrt(var + BN_EPS)
        return v * s + (b - m * s)

    h_ref = jnp.dot(x.astype(jnp.bfloat16), w1.astype(jnp.bfloat16),
                    preferred_element_type=jnp.float32)
    h_ref = jnp.maximum(_bn(h_ref, gamma1, beta1), 0.0)
    z_ref = jnp.dot(h_ref.astype(jnp.bfloat16), w2.astype(jnp.bfloat16),
                    preferred_element_type=jnp.float32)
    ref = _bn(z_ref, gamma2, beta2)

    assert out.shape == (B, D_OUT)
    err = float(jnp.max(jnp.abs(out - ref)))
    assert jnp.allclose(out, ref, atol=3e-3, rtol=3e-3), err
    print("KERNEL_OK")
</pallas_src>

<mosaic_0001>
module attributes {stable_mosaic.version = 11 : i64} {
  func.func @_projection_head_kernel(%arg0: i32, %arg1: memref<16x128xbf16, #tpu.memory_space<vmem>>, %arg2: memref<128x128xbf16, #tpu.memory_space<vmem>>, %arg3: memref<2x128xf32, #tpu.memory_space<vmem>>, %arg4: memref<128x128xbf16, #tpu.memory_space<vmem>>, %arg5: memref<2x128xf32, #tpu.memory_space<vmem>>, %arg6: memref<16x128xf32, #tpu.memory_space<vmem>>, %arg7: memref<16x128xf32, #tpu.memory_space<vmem>>) attributes {dimension_semantics = [#tpu.dimension_semantics<arbitrary>], iteration_bounds = array<i64: 1>, scalar_prefetch = 0 : i64, scratch_operands = 1 : i64, tpu.core_type = #tpu.core_type<tc>, window_params = [{pipeline_mode = #tpu.pipeline_mode<synchronous>, transform_indices = @transform_0, window_bounds = array<i64: 16, 128>}, {transform_indices = @transform_1, window_bounds = array<i64: 128, 128>}, {transform_indices = @transform_2, window_bounds = array<i64: 2, 128>}, {transform_indices = @transform_3, window_bounds = array<i64: 128, 128>}, {pipeline_mode = #tpu.pipeline_mode<synchronous>, transform_indices = @transform_4, window_bounds = array<i64: 2, 128>}, {pipeline_mode = #tpu.pipeline_mode<synchronous>, transform_indices = @transform_5, window_bounds = array<i64: 16, 128>}]} {
    %c0 = arith.constant 0 : index
    %c0_0 = arith.constant 0 : index
    %0 = vector.load %arg1[%c0, %c0_0] : memref<16x128xbf16, #tpu.memory_space<vmem>>, vector<16x128xbf16>
    %c0_1 = arith.constant 0 : index
    %c0_2 = arith.constant 0 : index
    %1 = vector.load %arg2[%c0_1, %c0_2] : memref<128x128xbf16, #tpu.memory_space<vmem>>, vector<128x128xbf16>
    %cst = arith.constant dense<0.000000e+00> : vector<16x128xf32>
    %2 = tpu.matmul %0, %1, %cst {dimension_numbers = #tpu.dot_dimension_numbers<[1], [0], [0], [1], [0, 0, 1, 1], [], []>} : vector<16x128xbf16>, vector<128x128xbf16>, vector<16x128xf32> -> vector<16x128xf32>
    %cst_3 = arith.constant dense<0.000000e+00> : vector<128xf32>
    %3 = vector.multi_reduction <add>, %2, %cst_3 [0] : vector<16x128xf32> to vector<128xf32>
    %4 = vector.shape_cast %3 : vector<128xf32> to vector<1x128xf32>
    %cst_4 = arith.constant 1.250000e-01 : f32
    %5 = vector.broadcast %cst_4 : f32 to vector<1x128xf32>
    %6 = arith.mulf %4, %5 : vector<1x128xf32>
    %7 = arith.mulf %2, %2 : vector<16x128xf32>
    %cst_5 = arith.constant dense<0.000000e+00> : vector<128xf32>
    %8 = vector.multi_reduction <add>, %7, %cst_5 [0] : vector<16x128xf32> to vector<128xf32>
    %9 = vector.shape_cast %8 : vector<128xf32> to vector<1x128xf32>
    %cst_6 = arith.constant 1.250000e-01 : f32
    %10 = vector.broadcast %cst_6 : f32 to vector<1x128xf32>
    %11 = arith.mulf %9, %10 : vector<1x128xf32>
    %12 = arith.mulf %6, %6 : vector<1x128xf32>
    %13 = arith.subf %11, %12 : vector<1x128xf32>
    %cst_7 = arith.constant 0.000000e+00 : f32
    %14 = vector.broadcast %cst_7 : f32 to vector<1x128xf32>
    %15 = arith.maximumf %13, %14 : vector<1x128xf32>
    %c0_8 = arith.constant 0 : index
    %c0_9 = arith.constant 0 : index
    %16 = vector.load %arg3[%c0_8, %c0_9] : memref<2x128xf32, #tpu.memory_space<vmem>>, vector<1x128xf32>
    %cst_10 = arith.constant 9.99999974E-6 : f32
    %17 = vector.broadcast %cst_10 : f32 to vector<1x128xf32>
    %18 = arith.addf %15, %17 : vector<1x128xf32>
    %19 = math.rsqrt %18 : vector<1x128xf32>
    %20 = arith.mulf %16, %19 : vector<1x128xf32>
    %c1 = arith.constant 1 : index
    %c0_11 = arith.constant 0 : index
    %21 = vector.load %arg3[%c1, %c0_11] : memref<2x128xf32, #tpu.memory_space<vmem>>, vector<1x128xf32>
    %22 = arith.mulf %6, %20 : vector<1x128xf32>
    %23 = arith.subf %21, %22 : vector<1x128xf32>
    %24 = vector.broadcast %20 : vector<1x128xf32> to vector<16x128xf32>
    %25 = arith.mulf %2, %24 : vector<16x128xf32>
    %26 = vector.broadcast %23 : vector<1x128xf32> to vector<16x128xf32>
    %27 = arith.addf %25, %26 : vector<16x128xf32>
    %cst_12 = arith.constant 0.000000e+00 : f32
    %28 = vector.broadcast %cst_12 : f32 to vector<16x128xf32>
    %29 = arith.maximumf %27, %28 : vector<16x128xf32>
    %30 = tpu.iota {dimensions = array<i32: 0>} : vector<16x1xi32>
    %c8_i32 = arith.constant 8 : i32
    %31 = vector.broadcast %c8_i32 : i32 to vector<16x1xi32>
    %32 = arith.cmpi slt, %30, %31 : vector<16x1xi32>
    %cst_13 = arith.constant 0.000000e+00 : f32
    %33 = vector.shape_cast %32 : vector<16x1xi1> to vector<16x1xi1>
    %34 = vector.broadcast %33 : vector<16x1xi1> to vector<16x128xi1>
    %35 = vector.broadcast %cst_13 : f32 to vector<16x128xf32>
    %36 = arith.select %34, %29, %35 : vector<16x128xi1>, vector<16x128xf32>
    %c0_i32 = arith.constant 0 : i32
    %37 = arith.cmpi eq, %arg0, %c0_i32 : i32
    %38 = arith.extui %37 : i1 to i32
    %c0_i32_14 = arith.constant 0 : i32
    %39 = arith.cmpi ne, %38, %c0_i32_14 : i32
    scf.if %39 {
      %cst_25 = arith.constant 0.000000e+00 : f32
      %49 = vector.broadcast %cst_25 : f32 to vector<16x128xf32>
      %c0_26 = arith.constant 0 : index
      %c0_27 = arith.constant 0 : index
      %50 = vector.load %arg7[%c0_26, %c0_27] : memref<16x128xf32, #tpu.memory_space<vmem>>, vector<16x128xf32>
      tpu.vector_store %arg7[%c0_26, %c0_27], %49 {strides = array<i32>} : memref<16x128xf32, #tpu.memory_space<vmem>>, vector<16x128xf32>,
    } else {
    }
    %c0_15 = arith.constant 0 : index
    %c0_16 = arith.constant 0 : index
    %40 = vector.load %arg7[%c0_15, %c0_16] : memref<16x128xf32, #tpu.memory_space<vmem>>, vector<16x128xf32>
    %41 = arith.truncf %36 : vector<16x128xf32> to vector<16x128xbf16>
    %c0_17 = arith.constant 0 : index
    %c0_18 = arith.constant 0 : index
    %42 = vector.load %arg4[%c0_17, %c0_18] : memref<128x128xbf16, #tpu.memory_space<vmem>>, vector<128x128xbf16>
    %cst_19 = arith.constant dense<0.000000e+00> : vector<16x128xf32>
    %43 = tpu.matmul %41, %42, %cst_19 {dimension_numbers = #tpu.dot_dimension_numbers<[1], [0], [0], [1], [0, 0, 1, 1], [], []>} : vector<16x128xbf16>, vector<128x128xbf16>, vector<16x128xf32> -> vector<16x128xf32>
    %44 = arith.addf %40, %43 : vector<16x128xf32>
    %c0_20 = arith.constant 0 : index
    %c0_21 = arith.constant 0 : index
    %45 = vector.load %arg7[%c0_20, %c0_21] : memref<16x128xf32, #tpu.memory_space<vmem>>, vector<16x128xf32>
    tpu.vector_store %arg7[%c0_20, %c0_21], %44 {strides = array<i32>} : memref<16x128xf32, #tpu.memory_space<vmem>>, vector<16x128xf32>,
    %c0_i32_22 = arith.constant 0 : i32
    %46 = arith.cmpi eq, %arg0, %c0_i32_22 : i32
    %47 = arith.extui %46 : i1 to i32
    %cst_23 = arith.constant 1.250000e-01 : f32
    %c0_i32_24 = arith.constant 0 : i32
    %48 = arith.cmpi ne, %47, %c0_i32_24 : i32
    scf.if %48 {
      %c0_25 = arith.constant 0 : index
      %c0_26 = arith.constant 0 : index
      %49 = vector.load %arg7[%c0_25, %c0_26] : memref<16x128xf32, #tpu.memory_space<vmem>>, vector<16x128xf32>
      %cst_27 = arith.constant dense<0.000000e+00> : vector<128xf32>
      %50 = vector.multi_reduction <add>, %49, %cst_27 [0] : vector<16x128xf32> to vector<128xf32>
      %51 = vector.shape_cast %50 : vector<128xf32> to vector<1x128xf32>
      %52 = vector.broadcast %cst_23 : f32 to vector<1x128xf32>
      %53 = arith.mulf %51, %52 : vector<1x128xf32>
      %54 = arith.mulf %49, %49 : vector<16x128xf32>
      %cst_28 = arith.constant dense<0.000000e+00> : vector<128xf32>
      %55 = vector.multi_reduction <add>, %54, %cst_28 [0] : vector<16x128xf32> to vector<128xf32>
      %56 = vector.shape_cast %55 : vector<128xf32> to vector<1x128xf32>
      %57 = vector.broadcast %cst_23 : f32 to vector<1x128xf32>
      %58 = arith.mulf %56, %57 : vector<1x128xf32>
      %59 = arith.mulf %53, %53 : vector<1x128xf32>
      %60 = arith.subf %58, %59 : vector<1x128xf32>
      %cst_29 = arith.constant 0.000000e+00 : f32
      %61 = vector.broadcast %cst_29 : f32 to vector<1x128xf32>
      %62 = arith.maximumf %60, %61 : vector<1x128xf32>
      %c0_30 = arith.constant 0 : index
      %c0_31 = arith.constant 0 : index
      %63 = vector.load %arg5[%c0_30, %c0_31] : memref<2x128xf32, #tpu.memory_space<vmem>>, vector<1x128xf32>
      %cst_32 = arith.constant 9.99999974E-6 : f32
      %64 = vector.broadcast %cst_32 : f32 to vector<1x128xf32>
      %65 = arith.addf %62, %64 : vector<1x128xf32>
      %66 = math.rsqrt %65 : vector<1x128xf32>
      %67 = arith.mulf %63, %66 : vector<1x128xf32>
      %c1_33 = arith.constant 1 : index
      %c0_34 = arith.constant 0 : index
      %68 = vector.load %arg5[%c1_33, %c0_34] : memref<2x128xf32, #tpu.memory_space<vmem>>, vector<1x128xf32>
      %69 = arith.mulf %53, %67 : vector<1x128xf32>
      %70 = arith.subf %68, %69 : vector<1x128xf32>
      %71 = vector.broadcast %67 : vector<1x128xf32> to vector<16x128xf32>
      %72 = arith.mulf %49, %71 : vector<16x128xf32>
      %73 = vector.broadcast %70 : vector<1x128xf32> to vector<16x128xf32>
      %74 = arith.addf %72, %73 : vector<16x128xf32>
      %c0_35 = arith.constant 0 : index
      %c0_36 = arith.constant 0 : index
      %75 = vector.load %arg6[%c0_35, %c0_36] : memref<16x128xf32, #tpu.memory_space<vmem>>, vector<16x128xf32>
      tpu.vector_store %arg6[%c0_35, %c0_36], %74 {strides = array<i32>} : memref<16x128xf32, #tpu.memory_space<vmem>>, vector<16x128xf32>,
    } else {
    }
    return
  }
  func.func @transform_0(%arg0: i32) -> (i32, i32) {
    %c0_i32 = arith.constant 0 : i32
    %c0_i32_0 = arith.constant 0 : i32
    %c0_i32_1 = arith.constant 0 : i32
    return %c0_i32, %c0_i32_0 : i32, i32
  }
  func.func @transform_1(%arg0: i32) -> (i32, i32) {
    %c0_i32 = arith.constant 0 : i32
    %c0_i32_0 = arith.constant 0 : i32
    return %c0_i32, %arg0 : i32, i32
  }
  func.func @transform_2(%arg0: i32) -> (i32, i32) {
    %c0_i32 = arith.constant 0 : i32
    %c0_i32_0 = arith.constant 0 : i32
    return %c0_i32, %arg0 : i32, i32
  }
  func.func @transform_3(%arg0: i32) -> (i32, i32) {
    %c0_i32 = arith.constant 0 : i32
    %c0_i32_0 = arith.constant 0 : i32
    return %arg0, %c0_i32 : i32, i32
  }
  func.func @transform_4(%arg0: i32) -> (i32, i32) {
    %c0_i32 = arith.constant 0 : i32
    %c0_i32_0 = arith.constant 0 : i32
    %c0_i32_1 = arith.constant 0 : i32
    return %c0_i32, %c0_i32_0 : i32, i32
  }
  func.func @transform_5(%arg0: i32) -> (i32, i32) {
    %c0_i32 = arith.constant 0 : i32
    %c0_i32_0 = arith.constant 0 : i32
    %c0_i32_1 = arith.constant 0 : i32
    return %c0_i32, %c0_i32_0 : i32, i32
  }
}

</mosaic_0001>

<bundles_post_ra>
// kernel: projection_head_forward.1
= control target key start
LH: loop header
LB: loop body
LE: loop exit
PB: predicated region body
PF: predicated region fallthrough
CT: control target
= control target key end

     0   :  { %10 = vsyncpa [#allocation4], 0  ;;  %s636_s0 = inlined_call_operand.vmem [shape: bf16[16,128], index: 0, kind: input, shape index: {}]   ;;  %s637_s1 = inlined_call_operand.hbm [shape: bf16[128,128], index: 1, kind: input, shape index: {}]   ;;  %s638_s2 = inlined_call_operand.vmem [shape: f32[2,128], index: 2, kind: input, shape index: {}]   ;;  %s639_s3 = inlined_call_operand.hbm [shape: bf16[128,128], index: 3, kind: input, shape index: {}]   ;;  %s640_s4 = inlined_call_operand.vmem [shape: f32[2,128], index: 4, kind: input, shape index: {}]   ;;  %s641_s5 = inlined_call_operand.vmem [shape: f32[16,128], index: 5, kind: output, shape index: {}]  }
   0x1   :  { %11 = vsyncpa [#allocation6], 0  ;;  %s536_s18 = smov [#allocation3]   ;;  %s488_s22 = scalar_lea.hbm %s637_s1, 1024 }
   0x2   :  { %s19_s19 = sshll.u32 %s536_s18, 4  ;;  %p489_p0 = scmp.ne.s32.totalorder %s637_s1, %s488_s22  ;;  %s20_s19 = int_to_ptr.vmem [resolvable:$true] %s19_s19 }
   0x3   :  { %p492_p1 = scmp.lt.u32.totalorder %s488_s22, %s637_s1 }
   0x5   :  { %p494_p2 = pnand %p492_p1, %p489_p0 }
   0x7   :  { %497 = shalt.err (!%p494_p2)
}
   0x8   :  { %s498_s27 = scalar_lea.vmem %s20_s19, 1024  ;;  %p503_p4 = scmp.lt.s32.totalorder %s20_s19, %s20_s19 }
   0x9   :  { %p499_p3 = scmp.ne.s32.totalorder %s20_s19, %s498_s27  ;;  %p504_p5 = scmp.lt.s32.totalorder %s498_s27, %s498_s27 }
   0xb   :  { %p505_p6 = por %p504_p5, %p503_p4 }
   0xd   :  { %p506_p7 = pnand %p505_p6, %p499_p3 }
   0xf   :  { %509 = shalt.err (!%p506_p7)
}
  0x10   :  { %s537_s28 = smov 64   ;;  %s538_s29 = smov 4  }
  0x11   :  { %25 = dma.hbm_to_vmem [thread:$0]  %s637_s1, 1024, %s20_s19, [#allocation4], %s537_s28, %s537_s28, %s538_s29  }
  0x12   :  { %s539_s7 = smov [#allocation5]   ;;  %s510_s11 = scalar_lea.hbm %s639_s3, 1024 }
  0x13   :  { %s33_s8 = sshll.u32 %s539_s7, 4  ;;  %p511_p8 = scmp.ne.s32.totalorder %s639_s3, %s510_s11  ;;  %s34_s8 = int_to_ptr.vmem [resolvable:$true] %s33_s8 }
  0x14   :  { %p514_p9 = scmp.lt.u32.totalorder %s510_s11, %s639_s3 }
  0x16   :  { %p516_p10 = pnand %p514_p9, %p511_p8 }
  0x18   :  { %519 = shalt.err (!%p516_p10)
}
  0x19   :  { %s520_s16 = scalar_lea.vmem %s34_s8, 1024  ;;  %p525_p12 = scmp.lt.s32.totalorder %s34_s8, %s34_s8 }
  0x1a   :  { %p521_p11 = scmp.ne.s32.totalorder %s34_s8, %s520_s16  ;;  %p526_p13 = scmp.lt.s32.totalorder %s520_s16, %s520_s16 }
  0x1c   :  { %p527_p0 = por %p526_p13, %p525_p12 }
  0x1e   :  { %p528_p1 = pnand %p527_p0, %p521_p11 }
  0x20   :  { %531 = shalt.err (!%p528_p1)
}
  0x21   :  { %39 = dma.hbm_to_vmem [thread:$0]  %s639_s3, 1024, %s34_s8, [#allocation6], %s537_s28, %s537_s28, %s538_s29  }
  0x22   :  { %532 = dma.done.wait [#allocation4], 1024  }
  0x23   :  { %533 = vsyncadd [#allocation4], 4294966272 }
  0x24   :  { %534 = dma.done.wait [#allocation6], 1024  }
  0x25   :  { %535 = vsyncadd [#allocation6], 4294966272  ;;  %v540_v0 = vmov 0.0   ;;  %vm541_vm0 = vmmov 0   ;;  %v467_v1 = vld [vmem:[#allocation3] sm:$0xff]   ;;  %v468_v2 = vld [vmem:[#allocation3 + $0x8] sm:$0xff]   ;;  %v190_v44 = vlaneseq }
  0x26   :  { %421 = vmatprep.subr.bf16.mxu0 %v540_v0  ;;  %437 = vmatprep.mubr.msk.bf16.mxu0 %vm541_vm0, %v540_v0  ;;  %v469_v3 = vld [vmem:[#allocation3 + $0x10] sm:$0xff]   ;;  %v470_v4 = vld [vmem:[#allocation3 + $0x18] sm:$0xff]   ;;  %v471_v5 = vld [vmem:[#allocation3 + $0x20] sm:$0xff]  }
  0x27   :  { %441 = vmatprep.subr.bf16.mxu1 %v540_v0  ;;  %457 = vmatprep.mubr.msk.bf16.mxu1 %vm541_vm0, %v540_v0  ;;  %v472_v6 = vld [vmem:[#allocation3 + $0x28] sm:$0xff]   ;;  %v473_v7 = vld [vmem:[#allocation3 + $0x30] sm:$0xff]   ;;  %v474_v8 = vld [vmem:[#allocation3 + $0x38] sm:$0xff]   ;;  %v191_v45 = vshrl.u32 %v190_v44, 7 }
  0x28   :  { %422 = vmatpush3.bf16.msra.mxu0 %v467_v1  ;;  %v475_v9 = vld [vmem:[%s636_s0] sm:$0xff]   ;;  %v477_v11 = vld [vmem:[#allocation5 + $0x8] sm:$0xff]   ;;  %v478_v12 = vld [vmem:[#allocation5 + $0x10] sm:$0xff]  }
  0x29   :  { %423 = vmatprep.subr.bf16.mxu0 %v540_v0  ;;  %v476_v10 = vld [vmem:[#allocation5] sm:$0xff]   ;;  %v479_v13 = vld [vmem:[#allocation5 + $0x18] sm:$0xff]   ;;  %v481_v15 = vld [vmem:[#allocation5 + $0x28] sm:$0xff]   ;;  %v192_v47 = vsub.s32 0, %v191_v45 }
  0x2a   :  { %442 = vmatpush3.bf16.msra.mxu1 %v476_v10  ;;  %v480_v14 = vld [vmem:[#allocation5 + $0x20] sm:$0xff]   ;;  %v482_v16 = vld [vmem:[#allocation5 + $0x30] sm:$0xff]   ;;  %v483_v17 = vld [vmem:[#allocation5 + $0x38] sm:$0xff]  }
  0x2b   :  { %443 = vmatprep.subr.bf16.mxu1 %v540_v0  ;;  %v183_v46 = vld [vmem:[%s638_s2] sm:$0x1]  ;;  %v187_v50 = vld [vmem:[%s638_s2 + $0x1] sm:$0x1] }
  0x2c   :  { %424 = vmatpush3.bf16.msra.mxu0 %v468_v2 }
  0x2d   :  { %425 = vmatprep.subr.bf16.mxu0 %v540_v0 }
  0x2e   :  { %444 = vmatpush3.bf16.msra.mxu1 %v477_v11 }
  0x2f   :  { %445 = vmatprep.subr.bf16.mxu1 %v540_v0 }
  0x30   :  { %426 = vmatpush3.bf16.msra.mxu0 %v469_v3 }
  0x31   :  { %427 = vmatprep.subr.bf16.mxu0 %v540_v0 }
  0x32   :  { %446 = vmatpush3.bf16.msra.mxu1 %v478_v12 }
  0x33   :  { %447 = vmatprep.subr.bf16.mxu1 %v540_v0 }
  0x34   :  { %428 = vmatpush3.bf16.msra.mxu0 %v470_v4 }
  0x35   :  { %429 = vmatprep.subr.bf16.mxu0 %v540_v0 }
  0x36   :  { %448 = vmatpush3.bf16.msra.mxu1 %v479_v13 }
  0x37   :  { %449 = vmatprep.subr.bf16.mxu1 %v540_v0 }
  0x38   :  { %430 = vmatpush3.bf16.msra.mxu0 %v471_v5 }
  0x39   :  { %431 = vmatprep.subr.bf16.mxu0 %v540_v0 }
  0x3a   :  { %450 = vmatpush3.bf16.msra.mxu1 %v480_v14 }
  0x3b   :  { %451 = vmatprep.subr.bf16.mxu1 %v540_v0 }
  0x3c   :  { %432 = vmatpush3.bf16.msra.mxu0 %v472_v6 }
  0x3d   :  { %433 = vmatprep.subr.bf16.mxu0 %v540_v0 }
  0x3e   :  { %452 = vmatpush3.bf16.msra.mxu1 %v481_v15 }
  0x3f   :  { %453 = vmatprep.subr.bf16.mxu1 %v540_v0 }
  0x40   :  { %434 = vmatpush3.bf16.msra.mxu0 %v473_v7 }
  0x41   :  { %435 = vmatprep.subr.bf16.mxu0 %v540_v0 }
  0x42   :  { %454 = vmatpush3.bf16.msra.mxu1 %v482_v16 }
  0x43   :  { %455 = vmatprep.subr.bf16.mxu1 %v540_v0 }
  0x44   :  { %436 = vmatpush3.bf16.msra.mxu0 %v474_v8 }
  0x46   :  { %456 = vmatpush3.bf16.msra.mxu1 %v483_v17 }
  0x47   :  { %438 = vmatmul.mubr.bf16.vlgmr.msra.gmra.mrb[0].mxu0 %v475_v9 }
 0x11a   :  { %v155_v18 = vpop.f32.mrb[0].mxu0 }
 0x11b   :  { %v439_v19 = vpop.f32.mrb[1].mxu0  ;;  %v170_v21 = vmul.f32 %v155_v18, %v155_v18 }
 0x11c   :  { %v158_v20 = vpop.f32.mrb[2].mxu0 }
 0x11d   :  { %v162_v22 = vadd.f32 %v158_v20, %v155_v18  ;;  %v171_v23 = vmul.f32 %v158_v20, %v158_v20  ;;  %v440_v24 = vpop.f32.mrb[3].mxu0 }
 0x11e   :  { %v363_v24 = vld [vmem:[%s640_s4 + $0x1] sm:$0x1] }
 0x11f   :  { %v163_v25 = vrot.slane %v162_v22, 4  ;;  %v172_v26 = vadd.f32 %v171_v23, %v170_v21  ;;  %v359_v21 = vld [vmem:[%s640_s4] sm:$0x1] }
 0x121   :  { %v164_v27 = vadd.f32 %v163_v25, %v162_v22  ;;  %v173_v28 = vrot.slane %v172_v26, 4 }
 0x123   :  { %v165_v29 = vrot.slane %v164_v27, 2  ;;  %v174_v30 = vadd.f32 %v173_v28, %v172_v26 }
 0x125   :  { %v166_v31 = vadd.f32 %v165_v29, %v164_v27  ;;  %v175_v32 = vrot.slane %v174_v30, 2 }
 0x127   :  { %v167_v33 = vrot.slane %v166_v31, 1  ;;  %v176_v34 = vadd.f32 %v175_v32, %v174_v30 }
 0x129   :  { %v168_v35 = vadd.f32 %v167_v33, %v166_v31  ;;  %v177_v36 = vrot.slane %v176_v34, 1 }
 0x12b   :  { %v169_v37 = vmul.f32 0.125, %v168_v35  ;;  %v178_v38 = vadd.f32 %v177_v36, %v176_v34 }
 0x12d   :  { %v179_v39 = vmul.f32 0.125, %v178_v38  ;;  %v180_v40 = vmul.f32 %v169_v37, %v169_v37 }
 0x12f   :  { %v181_v41 = vsub.f32 %v179_v39, %v180_v40 }
 0x131   :  { %v182_v42 = vmax.f32 %v181_v41, 0.0 }
 0x133   :  { %v184_v43 = vadd.f32 1e-05, %v182_v42 }
 0x135   :  { %484 = vrsqrt.f32 %v184_v43 }
 0x13f   :  { %v485_v48 = vpop.eup %484 }
 0x140   :  { %v186_v49 = vmul.f32 %v485_v48, %v183_v46 }
 0x142   :  { %v188_v51 = vmul.f32 %v186_v49, %v169_v37  ;;  %v193_v52 = vrot.slane %v186_v49, %v192_v47 }
 0x144   :  { %v189_v53 = vsub.f32 %v187_v50, %v188_v51  ;;  %v194_v54 = vmul.f32 %v193_v52, %v155_v18 }
 0x146   :  { %v199_v55 = vrot.slane %v189_v53, %v192_v47 }
 0x148   :  { %v200_v56 = vadd.f32 %v199_v55, %v194_v54 }
 0x14a   :  { %v202_v57 = vmax.f32 %v200_v56, 0.0 }
 0x14c   :  { %v223_v58 = vpack.c.bf16 %v540_v0, %v202_v57 }
 0x14e   :  { %458 = vmatmul.mubr.bf16.vlgmr.msra.gmra.mrb[0].mxu1 %v223_v58 }
 0x221   :  { %v322_v59 = vpop.f32.mrb[0].mxu1 }
 0x222   :  { %v459_v60 = vpop.f32.mrb[1].mxu1  ;;  %v346_v62 = vmul.f32 %v322_v59, %v322_v59 }
 0x223   :  { %v325_v61 = vpop.f32.mrb[2].mxu1 }
 0x224   :  { %v338_v63 = vadd.f32 %v325_v61, %v322_v59  ;;  %v347_v1 = vmul.f32 %v325_v61, %v325_v61  ;;  %v460_v2 = vpop.f32.mrb[3].mxu1 }
 0x226   :  { %v339_v3 = vrot.slane %v338_v63, 4  ;;  %v348_v4 = vadd.f32 %v347_v1, %v346_v62 }
 0x228   :  { %v340_v5 = vadd.f32 %v339_v3, %v338_v63  ;;  %v349_v6 = vrot.slane %v348_v4, 4 }
 0x22a   :  { %v341_v7 = vrot.slane %v340_v5, 2  ;;  %v350_v8 = vadd.f32 %v349_v6, %v348_v4 }
 0x22c   :  { %v342_v9 = vadd.f32 %v341_v7, %v340_v5  ;;  %v351_v10 = vrot.slane %v350_v8, 2 }
 0x22e   :  { %v343_v11 = vrot.slane %v342_v9, 1  ;;  %v352_v12 = vadd.f32 %v351_v10, %v350_v8 }
 0x230   :  { %v344_v13 = vadd.f32 %v343_v11, %v342_v9  ;;  %v353_v0 = vrot.slane %v352_v12, 1 }
 0x232   :  { %v345_v14 = vmul.f32 0.125, %v344_v13  ;;  %v354_v15 = vadd.f32 %v353_v0, %v352_v12 }
 0x234   :  { %v355_v16 = vmul.f32 0.125, %v354_v15  ;;  %v356_v17 = vmul.f32 %v345_v14, %v345_v14 }
 0x236   :  { %v357_v18 = vsub.f32 %v355_v16, %v356_v17 }
 0x238   :  { %v358_v19 = vmax.f32 %v357_v18, 0.0 }
 0x23a   :  { %v360_v20 = vadd.f32 1e-05, %v358_v19 }
 0x23c   :  { %486 = vrsqrt.f32 %v360_v20 }
 0x246   :  { %v487_v22 = vpop.eup %486 }
 0x247   :  { %v362_v23 = vmul.f32 %v487_v22, %v359_v21 }
 0x249   :  { %v364_v25 = vmul.f32 %v362_v23, %v345_v14  ;;  %v369_v26 = vrot.slane %v362_v23, %v192_v47 }
 0x24b   :  { %v365_v27 = vsub.f32 %v363_v24, %v364_v25  ;;  %v370_v28 = vmul.f32 %v369_v26, %v322_v59  ;;  %v371_v29 = vmul.f32 %v369_v26, %v325_v61 }
 0x24d   :  { %v375_v30 = vrot.slane %v365_v27, %v192_v47 }
 0x24f   :  { %v376_v31 = vadd.f32 %v375_v30, %v370_v28  ;;  %v377_v32 = vadd.f32 %v375_v30, %v371_v29 }
 0x251   :  { %378 = vst [vmem:[%s641_s5] sm:$0xff] %v376_v31  ;;  %379 = vst [vmem:[%s641_s5 + $0x8] sm:$0xff] %v377_v32 }
 0x252   :  { %384 = vsyncpa [#allocation4], 1 }
 0x253   :  { %385 = vsyncpa [#allocation6], 1 }

</bundles_post_ra>
